<compile_context>
chip_gen: v7x
topology: tpu7x:2x2x1
jax: 0.10.0
libtpu: 0.0.40
codegen_flags: <defaults>
</compile_context>

<pallas_src>
import functools

import jax
import jax.numpy as jnp
from jax.experimental import pallas as pl
from jax.experimental.pallas import tpu as pltpu


def _round_up(x, m):
    return (x + m - 1) // m * m


def _softmax_rows(logits, o_ref):
    """Numerically-stable softmax over the last axis; divide on the EUP."""
    m = jnp.max(logits, axis=-1, keepdims=True)
    e = jnp.exp(logits - m)
    denom = jnp.sum(e, axis=-1, keepdims=True)
    inv = pl.reciprocal(denom, approx=True)      # EUP slot (otherwise idle here)
    inv = inv * (2.0 - denom * inv)              # one Newton step -> ~exact 1/denom
    o_ref[...] = (e * inv).astype(o_ref.dtype)


def _lm_head_softmax_single_kernel(x_ref, w_ref, b_ref, o_ref):
    """Whole (padded) vocab fits in one lane tile: fully fused matmul+softmax.

    x_ref: [tm, H]  bf16 hidden rows     w_ref: [H, V] bf16 LM-head weight
    b_ref: [1,  V]  f32 bias             o_ref: [tm, V] probabilities
    """
    s = jnp.dot(x_ref[...], w_ref[...], preferred_element_type=jnp.float32)
    _softmax_rows(s + b_ref[...], o_ref)


def _lm_head_softmax_tiled_kernel(x_ref, w_ref, b_ref, o_ref, logits_ref):
    """Vocab streamed in tiles of tv (grid axis 1, "arbitrary").

    Raw f32 logits for the current row block are staged into a full-vocab-width
    VMEM buffer (tile offsets are 128-lane aligned); the softmax is applied and
    the resident output block written once, on the last vocab tile.
    x_ref: [tm, H]  w_ref: [H, tv]  b_ref: [1, tv]
    o_ref: [tm, Vp] (resident across the vocab axis)   logits_ref: [tm, Vp] f32
    """
    j = pl.program_id(1)
    tv = w_ref.shape[-1]

    s = jnp.dot(x_ref[...], w_ref[...], preferred_element_type=jnp.float32)
    off = pl.multiple_of(j * tv, 128)            # 128-lane-aligned tile offset
    logits_ref[:, pl.ds(off, tv)] = s + b_ref[...]

    @pl.when(j == pl.num_programs(1) - 1)
    def _finalize():
        _softmax_rows(logits_ref[...], o_ref)


@functools.partial(jax.jit, static_argnames=("tm", "tv", "out_dtype"))
def lm_head_softmax(hidden, w, b, *, tm=256, tv=512, out_dtype=jnp.float32):
    """probs = softmax(hidden @ w + b, axis=-1), fused on TPU.

    hidden: [N, H] (any float dtype; fed to the MXU as bf16)
    w:      [H, V]   b: [V]
    Returns [N, V] in `out_dtype` (pass jnp.bfloat16 to halve HBM writeback).
    """
    N, H = hidden.shape
    V = w.shape[1]

    # Row tile: as large as practical (amortizes ~0.35us/grid-step overhead and
    # fills the MXU), never larger than the 8-aligned row count.  At real sizes
    # N // tm >= 2, so the "parallel" row axis can shard across v7x's 2 cores.
    tm_eff = min(tm, _round_up(N, 8))
    n_pad = _round_up(N, tm_eff)
    # Vocab tile: multiple of 128 lanes; the (H, V) weight is streamed along it
    # so it never has to be VMEM-resident (v7x: 64 MiB physical VMEM).
    tv_eff = min(tv, _round_up(V, 128))
    v_pad = _round_up(V, tv_eff)
    h_pad = _round_up(H, 8)

    # bf16 operands for the MXU (f32 accumulation inside the kernel).
    x = hidden.astype(jnp.bfloat16)
    wb = w.astype(jnp.bfloat16)
    bb = b.astype(jnp.float32).reshape(1, V)
    if (n_pad, h_pad) != (N, H):
        x = jnp.pad(x, ((0, n_pad - N), (0, h_pad - H)))
    if (h_pad, v_pad) != (H, V):
        wb = jnp.pad(wb, ((0, h_pad - H), (0, v_pad - V)))
    if v_pad != V:
        # Huge negative bias on padded vocab columns -> exp underflows to 0, so
        # they do not perturb the softmax denominator of the real columns.
        bb = jnp.pad(bb, ((0, 0), (0, v_pad - V)), constant_values=-1e30)

    nv = v_pad // tv_eff
    grid = (n_pad // tm_eff, nv)

    in_specs = [
        pl.BlockSpec((tm_eff, h_pad), lambda i, j: (i, 0)),   # activation rows
        pl.BlockSpec((h_pad, tv_eff), lambda i, j: (0, j)),   # streamed weight tile
        pl.BlockSpec((1, tv_eff), lambda i, j: (0, j)),       # bias tile
    ]
    # Output block stays resident across the vocab ("arbitrary") axis and is
    # written back when the row index advances.
    out_specs = pl.BlockSpec((tm_eff, v_pad), lambda i, j: (i, 0))

    if nv == 1:
        kernel = _lm_head_softmax_single_kernel
        scratch_shapes = []
    else:
        kernel = _lm_head_softmax_tiled_kernel
        scratch_shapes = [pltpu.VMEM((tm_eff, v_pad), jnp.float32)]  # staged logits

    out = pl.pallas_call(
        kernel,
        out_shape=jax.ShapeDtypeStruct((n_pad, v_pad), out_dtype),
        grid_spec=pltpu.PrefetchScalarGridSpec(
            num_scalar_prefetch=0,
            grid=grid,
            in_specs=in_specs,
            out_specs=out_specs,
            scratch_shapes=scratch_shapes,
        ),
        compiler_params=pltpu.CompilerParams(
            dimension_semantics=("parallel", "arbitrary"),
            vmem_limit_bytes=48 * 1024 * 1024,
        ),
    )(x, wb, bb)
    return out[:N, :V]


class PolicyGradientNetworkPallas:
    """JAX/Pallas stand-in for the PyTorch PolicyGradientNetwork."""

    def __init__(self, vocab_size=128, hidden=32, max_seq=64, key=None):
        if key is None:
            key = jax.random.PRNGKey(0)
        k_emb, k_pos, k_w, k_b = jax.random.split(key, 4)
        self.vocab_size = vocab_size
        self.hidden = hidden
        # Deterministic synthetic parameters (tiny Blenderbot-like config).
        # LM-head weight stored in bf16: fast MXU operand dtype on v6e/v7x and
        # half the HBM/VMEM traffic; accumulation stays f32 in the kernel.
        self.tok_emb = jax.random.normal(k_emb, (vocab_size, hidden), jnp.float32) * 0.02
        self.pos_emb = jax.random.normal(k_pos, (max_seq, hidden), jnp.float32) * 0.02
        self.lm_w = (jax.random.normal(k_w, (hidden, vocab_size), jnp.float32) * 0.02
                     ).astype(jnp.bfloat16)
        self.lm_b = jax.random.normal(k_b, (vocab_size,), jnp.float32) * 0.02

    def __call__(self, inputs):
        # inputs: dict with "input_ids": int32 [B, S]  (mirrors self.model(**inputs))
        ids = inputs["input_ids"]
        B, S = ids.shape
        # TODO(synk): embedding gather kept in plain JAX; fusing it via scalar-
        # prefetched ids + a DMA row gather would save one [B*S, H] HBM round
        # trip at real sizes (the pretrained encoder/decoder stack itself is
        # not reproduced).
        hidden = self.tok_emb[ids] + self.pos_emb[:S][None, :, :]          # [B, S, H]
        flat = hidden.reshape(B * S, self.hidden)                          # [B*S, H]
        # Hot path in Pallas: LM-head matmul + softmax over vocab (dim=2).
        probs = lm_head_softmax(flat, self.lm_w, self.lm_b)                # [B*S, V]
        return probs.reshape(B, S, self.vocab_size)


if __name__ == "__main__":
    key = jax.random.PRNGKey(0)
    k_model, k_ids = jax.random.split(key)

    B, S, H, V = 2, 8, 32, 128
    net = PolicyGradientNetworkPallas(vocab_size=V, hidden=H, max_seq=64, key=k_model)

    input_ids = jax.random.randint(k_ids, (B, S), 0, V, dtype=jnp.int32)
    inputs = {"input_ids": input_ids}

    out = net(inputs)
    out = jax.block_until_ready(out)

    # Sanity checks: shape, proper softmax over dim=2, and match vs. plain JAX.
    assert out.shape == (B, S, V)
    row_sums = jnp.sum(out, axis=2)
    assert jnp.allclose(row_sums, jnp.ones_like(row_sums), atol=1e-4)
    assert bool(jnp.all(out >= 0.0)) and bool(jnp.all(jnp.isfinite(out)))

    hidden = net.tok_emb[input_ids] + net.pos_emb[:S][None, :, :]
    flat = hidden.reshape(B * S, H)
    logits_ref = (flat.astype(jnp.bfloat16).astype(jnp.float32)
                  @ net.lm_w.astype(jnp.float32)) + net.lm_b
    ref = jax.nn.softmax(logits_ref, axis=-1).reshape(B, S, V)
    assert jnp.allclose(out, ref, atol=2e-3)

    print("KERNEL_OK")
</pallas_src>

<mosaic_0001>
module attributes {stable_mosaic.version = 11 : i64} {
  func.func @_lm_head_softmax_single_kernel(%arg0: i32, %arg1: i32, %arg2: memref<16x32xbf16, #tpu.memory_space<vmem>>, %arg3: memref<32x128xbf16, #tpu.memory_space<vmem>>, %arg4: memref<1x128xf32, #tpu.memory_space<vmem>>, %arg5: memref<16x128xf32, #tpu.memory_space<vmem>>) attributes {dimension_semantics = [#tpu.dimension_semantics<parallel>, #tpu.dimension_semantics<arbitrary>], iteration_bounds = array<i64: 1, 1>, scalar_prefetch = 0 : i64, scratch_operands = 0 : i64, tpu.core_type = #tpu.core_type<tc>, window_params = [{transform_indices = @transform_0, window_bounds = array<i64: 16, 32>}, {transform_indices = @transform_1, window_bounds = array<i64: 32, 128>}, {transform_indices = @transform_2, window_bounds = array<i64: 1, 128>}, {transform_indices = @transform_3, window_bounds = array<i64: 16, 128>}]} {
    %c0 = arith.constant 0 : index
    %c0_0 = arith.constant 0 : index
    %0 = vector.load %arg2[%c0, %c0_0] : memref<16x32xbf16, #tpu.memory_space<vmem>>, vector<16x32xbf16>
    %c0_1 = arith.constant 0 : index
    %c0_2 = arith.constant 0 : index
    %1 = vector.load %arg3[%c0_1, %c0_2] : memref<32x128xbf16, #tpu.memory_space<vmem>>, vector<32x128xbf16>
    %cst = arith.constant dense<0.000000e+00> : vector<16x128xf32>
    %2 = tpu.matmul %0, %1, %cst {dimension_numbers = #tpu.dot_dimension_numbers<[1], [0], [0], [1], [0, 0, 1, 1], [], []>} : vector<16x32xbf16>, vector<32x128xbf16>, vector<16x128xf32> -> vector<16x128xf32>
    %c0_3 = arith.constant 0 : index
    %c0_4 = arith.constant 0 : index
    %3 = vector.load %arg4[%c0_3, %c0_4] : memref<1x128xf32, #tpu.memory_space<vmem>>, vector<1x128xf32>
    %4 = vector.broadcast %3 : vector<1x128xf32> to vector<16x128xf32>
    %5 = arith.addf %2, %4 : vector<16x128xf32>
    %cst_5 = arith.constant dense<0xFF800000> : vector<16xf32>
    %6 = vector.multi_reduction <maximumf>, %5, %cst_5 [1] : vector<16x128xf32> to vector<16xf32>
    %7 = vector.shape_cast %6 : vector<16xf32> to vector<16x1xf32>
    %8 = vector.broadcast %7 : vector<16x1xf32> to vector<16x128xf32>
    %9 = arith.subf %5, %8 : vector<16x128xf32>
    %10 = math.exp %9 : vector<16x128xf32>
    %cst_6 = arith.constant dense<0.000000e+00> : vector<16xf32>
    %11 = vector.multi_reduction <add>, %10, %cst_6 [1] : vector<16x128xf32> to vector<16xf32>
    %12 = vector.shape_cast %11 : vector<16xf32> to vector<16x1xf32>
    %13 = tpu.reciprocal %12 {approx = true} : vector<16x1xf32> -> vector<16x1xf32>
    %14 = arith.mulf %12, %13 : vector<16x1xf32>
    %cst_7 = arith.constant 2.000000e+00 : f32
    %15 = vector.broadcast %cst_7 : f32 to vector<16x1xf32>
    %16 = arith.subf %15, %14 : vector<16x1xf32>
    %17 = arith.mulf %13, %16 : vector<16x1xf32>
    %18 = vector.broadcast %17 : vector<16x1xf32> to vector<16x128xf32>
    %19 = arith.mulf %10, %18 : vector<16x128xf32>
    %c0_8 = arith.constant 0 : index
    %c0_9 = arith.constant 0 : index
    %20 = vector.load %arg5[%c0_8, %c0_9] : memref<16x128xf32, #tpu.memory_space<vmem>>, vector<16x128xf32>
    tpu.vector_store %arg5[%c0_8, %c0_9], %19 {strides = array<i32>} : memref<16x128xf32, #tpu.memory_space<vmem>>, vector<16x128xf32>,
    return
  }
  func.func @transform_0(%arg0: i32, %arg1: i32) -> (i32, i32) {
    %c0_i32 = arith.constant 0 : i32
    %c0_i32_0 = arith.constant 0 : i32
    return %arg0, %c0_i32 : i32, i32
  }
  func.func @transform_1(%arg0: i32, %arg1: i32) -> (i32, i32) {
    %c0_i32 = arith.constant 0 : i32
    %c0_i32_0 = arith.constant 0 : i32
    return %c0_i32, %arg1 : i32, i32
  }
  func.func @transform_2(%arg0: i32, %arg1: i32) -> (i32, i32) {
    %c0_i32 = arith.constant 0 : i32
    %c0_i32_0 = arith.constant 0 : i32
    return %c0_i32, %arg1 : i32, i32
  }
  func.func @transform_3(%arg0: i32, %arg1: i32) -> (i32, i32) {
    %c0_i32 = arith.constant 0 : i32
    %c0_i32_0 = arith.constant 0 : i32
    return %arg0, %c0_i32 : i32, i32
  }
}

</mosaic_0001>

<bundles_post_ra>
// kernel: lm_head_softmax.1
= control target key start
LH: loop header
LB: loop body
LE: loop exit
PB: predicated region body
PF: predicated region fallthrough
CT: control target
= control target key end

     0   :  { %v189_v1 = vmov 0.0   ;;  %vm190_vm0 = vmmov 0   ;;  %s238_s0 = inlined_call_operand.vmem [shape: bf16[16,32], index: 0, kind: input, shape index: {}]   ;;  %s239_s1 = inlined_call_operand.vmem [shape: bf16[32,128], index: 1, kind: input, shape index: {}]   ;;  %s240_s2 = inlined_call_operand.vmem [shape: f32[1,128], index: 2, kind: input, shape index: {}]   ;;  %s241_s3 = inlined_call_operand.hbm [shape: f32[16,128], index: 3, kind: output, shape index: {}]  }
   0x1   :  { %v154_v0 = vld [vmem:[%s239_s1] sm:$0xff]   ;;  %141 = vmatprep.subr.bf16.mxu0 %v189_v1  ;;  %v155_v2 = vld [vmem:[%s239_s1 + $0x8] sm:$0xff]   ;;  %145 = vmatprep.mubr.msk.bf16.mxu0 %vm190_vm0, %v189_v1 }
   0x2   :  { %142 = vmatpush3.bf16.msra.mxu0 %v154_v0 }
   0x3   :  { %143 = vmatprep.subr.bf16.mxu0 %v189_v1 }
   0x4   :  { %8 = vsyncpa [#allocation3], 0  ;;  %v156_v3 = vld [vmem:[%s238_s0] sm:$0xff]   ;;  %vm46_vm1 = vcmask 261120   ;;  %s191_s0 = smov [#allocation2]  }
   0x5   :  { %v133_v4 = vld [vmem:[%s240_s2] ss:$0 sm:$0xff]  ;;  %s122_s1 = sshll.u32 %s191_s0, 4  ;;  %s123_s1 = int_to_ptr.vmem [resolvable:$true] %s122_s1 }
   0x6   :  { %144 = vmatpush3.bf16.msra.mxu0 %v155_v2  ;;  %s165_s2 = scalar_lea.vmem %s123_s1, 256  ;;  %p170_p1 = scmp.lt.s32.totalorder %s123_s1, %s123_s1 }
   0x7   :  { %p166_p0 = scmp.ne.s32.totalorder %s123_s1, %s165_s2  ;;  %p171_p2 = scmp.lt.s32.totalorder %s165_s2, %s165_s2 }
   0x9   :  { %146 = vmatmul.mubr.msk.bf16.vlgmr.msra.gmra.mrb[0].mxu0 %vm46_vm1, %v156_v3  ;;  %p172_p3 = por %p171_p2, %p170_p1 }
   0xb   :  { %p173_p4 = pnand %p172_p3, %p166_p0 }
  0xdc   :  { %v84_v5 = vpop.f32.mrb[0].mxu0 }
  0xdd   :  { %v85_v6 = vadd.f32 %v133_v4, %v84_v5  ;;  %v147_v7 = vpop.f32.mrb[1].mxu0 }
  0xde   :  { %v87_v8 = vpop.f32.mrb[2].mxu0 }
  0xdf   :  { %91 = vmax.xlane.f32.xlu0 %v85_v6  ;;  %v148_v9 = vpop.f32.mrb[3].mxu0  ;;  %v88_v10 = vadd.f32 %v133_v4, %v87_v8 }
  0xe3   :  { %93 = vmax.xlane.f32.xlu0 %v88_v10 }
 0x16c   :  { %v92_v11 = vpop.xlane.xlu0 %91 }
 0x16d   :  { %v95_v12 = vsub.f32 %v85_v6, %v92_v11 }
 0x16f   :  { %v97_v13 = vmul.f32 1.442695, %v95_v12 }
 0x170   :  { %v94_v14 = vpop.xlane.xlu0 %93 }
 0x171   :  { %157 = vpow2.f32 %v97_v13  ;;  %v96_v15 = vsub.f32 %v88_v10, %v94_v14 }
 0x173   :  { %v99_v16 = vmul.f32 1.442695, %v96_v15 }
 0x175   :  { %159 = vpow2.f32 %v99_v16 }
 0x17b   :  { %v158_v17 = vpop.eup %157 }
 0x17c   :  { %101 = vadd.xlane.f32.xlu1 %v158_v17 }
 0x17f   :  { %v160_v18 = vpop.eup %159 }
 0x180   :  { %103 = vadd.xlane.f32.xlu1 %v160_v18 }
 0x209   :  { %v102_v19 = vpop.xlane.xlu1 %101 }
 0x20a   :  { %161 = vrcp.f32 %v102_v19 }
 0x20d   :  { %v104_v20 = vpop.xlane.xlu1 %103 }
 0x20e   :  { %163 = vrcp.f32 %v104_v20 }
 0x214   :  { %v162_v21 = vpop.eup %161 }
 0x215   :  { %v107_v22 = vmul.f32 %v162_v21, %v102_v19 }
 0x217   :  { %v109_v23 = vsub.f32 2.0, %v107_v22 }
 0x218   :  { %v164_v24 = vpop.eup %163 }
 0x219   :  { %v111_v25 = vmul.f32 %v162_v21, %v109_v23  ;;  %v108_v26 = vmul.f32 %v164_v24, %v104_v20 }
 0x21b   :  { %v113_v27 = vmul.f32 %v158_v17, %v111_v25  ;;  %v110_v28 = vsub.f32 2.0, %v108_v26 }
 0x21d   :  { %115 = vst [vmem:[#allocation2] sm:$0xff] %v113_v27  ;;  %v112_v29 = vmul.f32 %v164_v24, %v110_v28 }
 0x21f   :  { %v114_v30 = vmul.f32 %v160_v18, %v112_v29 }
 0x221   :  { %116 = vst [vmem:[#allocation2 + $0x8] sm:$0xff] %v114_v30 }
 0x222   :  { %176 = shalt.err (!%p173_p4)
}
 0x223   :  { %s177_s22 = scalar_lea.hbm %s241_s3, 256 }
 0x224   :  { %p178_p5 = scmp.ne.s32.totalorder %s241_s3, %s177_s22  ;;  %p181_p6 = scmp.lt.u32.totalorder %s177_s22, %s241_s3 }
 0x226   :  { %p183_p7 = pnand %p181_p6, %p178_p5 }
 0x228   :  { %186 = shalt.err (!%p183_p7)
}
 0x229   :  { %s192_s27 = smov 128   ;;  %s193_s28 = smov 8  }
 0x22a   :  { %128 = dma.vmem_to_hbm [thread:$0]  %s123_s1, 256, %s241_s3, [#allocation3], %s192_s27, %s192_s27, %s193_s28  }
 0x22b   :  { %187 = dma.done.wait [#allocation3], 256  }
 0x22c   :  { %188 = vsyncadd [#allocation3], 4294967040 }
 0x22d   :  { %132 = vsyncpa [#allocation3], 1 }

</bundles_post_ra>
